<compile_context>
chip_gen: v5e
topology: v5e:2x2
jax: 0.10.0
libtpu: 0.0.40
codegen_flags: <defaults>
</compile_context>

<pallas_src>
import functools

import jax
import jax.numpy as jnp
from jax.experimental import pallas as pl
from jax.experimental.pallas import tpu as pltpu

HIDDEN = 512
BN_EPS = 1e-5
LEAKY_SLOPE = 0.2


def _round_up(x, m):
    return (x + m - 1) // m * m


def _vmem_limit(*tile_bytes):
    # double-buffered tiles + headroom, capped at v7x's 64 MiB physical VMEM
    est = 2 * sum(int(t) for t in tile_bytes) + (8 << 20)
    return max(min(est, 64 << 20), 16 << 20)


# ---------------------------------------------------------------------------
# Kernel 1: hidden activations + per-feature batch statistics (sum, sum-sq)
# grid = (num_feature_tiles [parallel], num_batch_tiles [arbitrary])
# ---------------------------------------------------------------------------
def _hidden_stats_kernel(x_ref, w1_ref, b1_ref, h_ref, stats_ref, *,
                         true_b, batch_tile):
    bi = pl.program_id(1)

    @pl.when(bi == 0)
    def _():
        stats_ref[...] = jnp.zeros_like(stats_ref)

    # Linear 1 on the MXU (inputs may be bf16; accumulate in f32).
    h = jnp.dot(x_ref[...], w1_ref[...], preferred_element_type=jnp.float32)
    h = h + b1_ref[...]                      # bias stays f32
    h_ref[...] = h

    # Mask rows beyond the true batch (zero-padded rows must not bias BN stats).
    row = bi * batch_tile + jax.lax.broadcasted_iota(jnp.int32, h.shape, 0)
    valid = (row < true_b).astype(jnp.float32)
    hv = h * valid
    stats_ref[0:1, :] += jnp.sum(hv, axis=0, keepdims=True)        # sum
    stats_ref[1:2, :] += jnp.sum(hv * hv, axis=0, keepdims=True)   # sum of squares


# ---------------------------------------------------------------------------
# Kernel 2: finalize BN, LeakyReLU, 512 -> 1 head (lane reduce, no N=1 matmul)
# grid = (num_batch_tiles [parallel])
# ---------------------------------------------------------------------------
def _normalize_head_kernel(h_ref, stats_ref, gamma_ref, beta_ref, w2_ref,
                           b2_ref, out_ref, *, true_b):
    inv_n = 1.0 / float(true_b)
    mean = stats_ref[0:1, :] * inv_n
    var = stats_ref[1:2, :] * inv_n - mean * mean
    var = jnp.maximum(var, 0.0)              # guard tiny negative from cancellation
    inv_std = jax.lax.rsqrt(var + BN_EPS)

    scale = inv_std * gamma_ref[...]
    shift = beta_ref[...] - mean * scale
    h = h_ref[...] * scale + shift

    # LeakyReLU(0.2): single vmax (slope in (0,1))
    h = jnp.maximum(h, LEAKY_SLOPE * h)

    # Linear 2 (512 -> 1) as broadcast-multiply + lane reduction.
    out_ref[...] = jnp.sum(h * w2_ref[...], axis=-1, keepdims=True) + b2_ref[...]


# ---------------------------------------------------------------------------
# Wrapper
# ---------------------------------------------------------------------------
def domain_classifier(x, w1, b1, gamma, beta, w2, b2, *,
                      use_bf16_matmul=True, batch_tile=256, feat_tile=HIDDEN):
    """x: (B, in_dim) f32; PyTorch-layout params. Returns (B, 1) f32."""
    B, in_dim = x.shape
    assert w1.shape == (HIDDEN, in_dim)
    assert HIDDEN % feat_tile == 0 and feat_tile % 128 == 0

    cdtype = jnp.bfloat16 if use_bf16_matmul else jnp.float32
    cbytes = jnp.dtype(cdtype).itemsize

    # ---- layout prep: pre-transpose W1, lift vectors to 2-D, cast MXU inputs ----
    w1_t = jnp.transpose(w1).astype(cdtype)               # (in_dim, 512)
    b1_2d = b1.reshape(1, HIDDEN).astype(jnp.float32)
    gamma_2d = gamma.reshape(1, HIDDEN).astype(jnp.float32)
    beta_2d = beta.reshape(1, HIDDEN).astype(jnp.float32)
    w2_row = w2.reshape(1, HIDDEN).astype(jnp.float32)    # head as a (1, 512) row
    b2_2d = b2.reshape(1, 1).astype(jnp.float32)

    # ---- batch tiling (pad B up to a multiple of the tile; mask in-kernel) ----
    bt = _round_up(min(batch_tile, _round_up(B, 8)), 8)
    B_pad = _round_up(B, bt)
    nb = B_pad // bt
    nf = HIDDEN // feat_tile

    x_c = x.astype(cdtype)
    if B_pad != B:
        x_c = jnp.pad(x_c, ((0, B_pad - B), (0, 0)))

    # ---- phase 1: hidden activations + batch statistics ----
    vmem1 = _vmem_limit(bt * in_dim * cbytes, in_dim * feat_tile * cbytes,
                        feat_tile * 4, bt * feat_tile * 4, 2 * feat_tile * 4)
    h, stats = pl.pallas_call(
        functools.partial(_hidden_stats_kernel, true_b=B, batch_tile=bt),
        out_shape=(jax.ShapeDtypeStruct((B_pad, HIDDEN), jnp.float32),
                   jax.ShapeDtypeStruct((2, HIDDEN), jnp.float32)),
        grid_spec=pltpu.PrefetchScalarGridSpec(
            num_scalar_prefetch=0,
            grid=(nf, nb),
            in_specs=[
                pl.BlockSpec((bt, in_dim), lambda fi, bi: (bi, 0)),       # x tile
                pl.BlockSpec((in_dim, feat_tile), lambda fi, bi: (0, fi)),  # W1^T
                pl.BlockSpec((1, feat_tile), lambda fi, bi: (0, fi)),       # b1
            ],
            out_specs=[
                pl.BlockSpec((bt, feat_tile), lambda fi, bi: (bi, fi)),     # h
                pl.BlockSpec((2, feat_tile), lambda fi, bi: (0, fi)),       # stats acc
            ],
        ),
        compiler_params=pltpu.CompilerParams(
            dimension_semantics=("parallel", "arbitrary"),
            vmem_limit_bytes=vmem1),
    )(x_c, w1_t, b1_2d)

    # ---- phase 2: normalize + LeakyReLU + 512->1 head ----
    vmem2 = _vmem_limit(bt * HIDDEN * 4, 2 * HIDDEN * 4, 3 * HIDDEN * 4,
                        4, bt * 4)
    out = pl.pallas_call(
        functools.partial(_normalize_head_kernel, true_b=B),
        out_shape=jax.ShapeDtypeStruct((B_pad, 1), jnp.float32),
        grid_spec=pltpu.PrefetchScalarGridSpec(
            num_scalar_prefetch=0,
            grid=(nb,),
            in_specs=[
                pl.BlockSpec((bt, HIDDEN), lambda bi: (bi, 0)),   # h tile
                pl.BlockSpec((2, HIDDEN), lambda bi: (0, 0)),     # stats
                pl.BlockSpec((1, HIDDEN), lambda bi: (0, 0)),     # gamma
                pl.BlockSpec((1, HIDDEN), lambda bi: (0, 0)),     # beta
                pl.BlockSpec((1, HIDDEN), lambda bi: (0, 0)),     # w2 row
                pl.BlockSpec((1, 1), lambda bi: (0, 0)),          # b2
            ],
            out_specs=pl.BlockSpec((bt, 1), lambda bi: (bi, 0)),
        ),
        compiler_params=pltpu.CompilerParams(
            dimension_semantics=("parallel",),
            vmem_limit_bytes=vmem2),
    )(h, stats, gamma_2d, beta_2d, w2_row, b2_2d)

    return out[:B]


# ---------------------------------------------------------------------------
# Params / reference
# ---------------------------------------------------------------------------
def init_params(key, in_dim):
    """Deterministic synthetic parameters (shapes match nn.Module __init__)."""
    k1, k2, k3, k4 = jax.random.split(key, 4)
    bound1 = 1.0 / jnp.sqrt(in_dim)
    w1 = jax.random.uniform(k1, (HIDDEN, in_dim), jnp.float32, -bound1, bound1)
    b1 = jax.random.uniform(k2, (HIDDEN,), jnp.float32, -bound1, bound1)
    gamma = jnp.ones((HIDDEN,), jnp.float32)
    beta = jnp.zeros((HIDDEN,), jnp.float32)
    bound2 = 1.0 / jnp.sqrt(HIDDEN)
    w2 = jax.random.uniform(k3, (1, HIDDEN), jnp.float32, -bound2, bound2)
    b2 = jax.random.uniform(k4, (1,), jnp.float32, -bound2, bound2)
    return w1, b1, gamma, beta, w2, b2


def reference_forward(x, w1, b1, gamma, beta, w2, b2, matmul_dtype=jnp.float32):
    """Pure-JAX reference matching the PyTorch forward (training-mode BN)."""
    h = jnp.dot(x.astype(matmul_dtype), w1.T.astype(matmul_dtype),
                preferred_element_type=jnp.float32) + b1
    mean = jnp.mean(h, axis=0, keepdims=True)
    var = jnp.mean((h - mean) ** 2, axis=0, keepdims=True)
    h = (h - mean) / jnp.sqrt(var + BN_EPS) * gamma + beta
    h = jnp.where(h >= 0.0, h, LEAKY_SLOPE * h)
    return h @ w2.T + b2


if __name__ == "__main__":
    key = jax.random.PRNGKey(0)
    k_x, k_p, k_x2 = jax.random.split(key, 3)

    # ---- primary small test: B=8, in_dim=32 ----
    B, in_dim = 8, 32
    x = jax.random.normal(k_x, (B, in_dim), jnp.float32)
    w1, b1, gamma, beta, w2, b2 = init_params(k_p, in_dim)
    ref_f32 = reference_forward(x, w1, b1, gamma, beta, w2, b2)

    # f32 MXU path: exact module semantics, strict tolerance.
    out_f32 = jax.block_until_ready(
        domain_classifier(x, w1, b1, gamma, beta, w2, b2, use_bf16_matmul=False))
    assert out_f32.shape == (B, 1), out_f32.shape
    assert jnp.allclose(out_f32, ref_f32, atol=1e-4, rtol=1e-4)

    # bf16 MXU-input path (halved HBM traffic for x/W1); compare against a
    # matched-precision reference tightly and the f32 reference loosely.
    out_bf16 = jax.block_until_ready(
        domain_classifier(x, w1, b1, gamma, beta, w2, b2, use_bf16_matmul=True))
    ref_bf16 = reference_forward(x, w1, b1, gamma, beta, w2, b2,
                                 matmul_dtype=jnp.bfloat16)
    assert jnp.allclose(out_bf16, ref_bf16, atol=1e-3, rtol=1e-3)
    assert jnp.allclose(out_bf16, ref_f32, atol=5e-2, rtol=5e-2)

    # v7x megacore feature-split variant (feat_tile=256) must match exactly too.
    out_split = jax.block_until_ready(
        domain_classifier(x, w1, b1, gamma, beta, w2, b2,
                          use_bf16_matmul=False, feat_tile=256))
    assert jnp.allclose(out_split, ref_f32, atol=1e-4, rtol=1e-4)

    # ---- multi-batch-tile test (exercises padding + cross-tile BN stats) ----
    B2, in_dim2 = 70, 96
    x2 = jax.random.normal(k_x2, (B2, in_dim2), jnp.float32)
    p2 = init_params(jax.random.PRNGKey(1), in_dim2)
    out2 = jax.block_until_ready(
        domain_classifier(x2, *p2, use_bf16_matmul=False, batch_tile=32))
    ref2 = reference_forward(x2, *p2)
    assert out2.shape == (B2, 1), out2.shape
    assert jnp.allclose(out2, ref2, atol=1e-4, rtol=1e-4)

    print("KERNEL_OK")
</pallas_src>

<mosaic_0001>
module attributes {stable_mosaic.version = 11 : i64} {
  func.func @_hidden_stats_kernel(%arg0: i32, %arg1: i32, %arg2: memref<8x32xf32, #tpu.memory_space<vmem>>, %arg3: memref<32x512xf32, #tpu.memory_space<vmem>>, %arg4: memref<1x512xf32, #tpu.memory_space<vmem>>, %arg5: memref<8x512xf32, #tpu.memory_space<vmem>>, %arg6: memref<2x512xf32, #tpu.memory_space<vmem>>) attributes {dimension_semantics = [#tpu.dimension_semantics<parallel>, #tpu.dimension_semantics<arbitrary>], iteration_bounds = array<i64: 1, 1>, scalar_prefetch = 0 : i64, scratch_operands = 0 : i64, tpu.core_type = #tpu.core_type<tc>, window_params = [{transform_indices = @transform_0, window_bounds = array<i64: 8, 32>}, {transform_indices = @transform_1, window_bounds = array<i64: 32, 512>}, {transform_indices = @transform_2, window_bounds = array<i64: 1, 512>}, {transform_indices = @transform_3, window_bounds = array<i64: 8, 512>}, {transform_indices = @transform_4, window_bounds = array<i64: 2, 512>}]} {
    %c0_i32 = arith.constant 0 : i32
    %0 = arith.cmpi eq, %arg1, %c0_i32 : i32
    %1 = arith.extui %0 : i1 to i32
    %c0_i32_0 = arith.constant 0 : i32
    %2 = arith.cmpi ne, %1, %c0_i32_0 : i32
    scf.if %2 {
      %cst_18 = arith.constant 0.000000e+00 : f32
      %30 = vector.broadcast %cst_18 : f32 to vector<2x512xf32>
      %c0_19 = arith.constant 0 : index
      %c0_20 = arith.constant 0 : index
      %31 = vector.load %arg6[%c0_19, %c0_20] : memref<2x512xf32, #tpu.memory_space<vmem>>, vector<2x512xf32>
      tpu.vector_store %arg6[%c0_19, %c0_20], %30 {strides = array<i32>} : memref<2x512xf32, #tpu.memory_space<vmem>>, vector<2x512xf32>,
    } else {
    }
    %c0 = arith.constant 0 : index
    %c0_1 = arith.constant 0 : index
    %3 = vector.load %arg2[%c0, %c0_1] : memref<8x32xf32, #tpu.memory_space<vmem>>, vector<8x32xf32>
    %c0_2 = arith.constant 0 : index
    %c0_3 = arith.constant 0 : index
    %4 = vector.load %arg3[%c0_2, %c0_3] : memref<32x512xf32, #tpu.memory_space<vmem>>, vector<32x512xf32>
    %cst = arith.constant dense<0.000000e+00> : vector<8x512xf32>
    %5 = tpu.matmul %3, %4, %cst {dimension_numbers = #tpu.dot_dimension_numbers<[1], [0], [0], [1], [0, 0, 1, 1], [], []>} : vector<8x32xf32>, vector<32x512xf32>, vector<8x512xf32> -> vector<8x512xf32>
    %c0_4 = arith.constant 0 : index
    %c0_5 = arith.constant 0 : index
    %6 = vector.load %arg4[%c0_4, %c0_5] : memref<1x512xf32, #tpu.memory_space<vmem>>, vector<1x512xf32>
    %7 = vector.broadcast %6 : vector<1x512xf32> to vector<8x512xf32>
    %8 = arith.addf %5, %7 : vector<8x512xf32>
    %c0_6 = arith.constant 0 : index
    %c0_7 = arith.constant 0 : index
    %9 = vector.load %arg5[%c0_6, %c0_7] : memref<8x512xf32, #tpu.memory_space<vmem>>, vector<8x512xf32>
    tpu.vector_store %arg5[%c0_6, %c0_7], %8 {strides = array<i32>} : memref<8x512xf32, #tpu.memory_space<vmem>>, vector<8x512xf32>,
    %c8_i32 = arith.constant 8 : i32
    %10 = arith.muli %arg1, %c8_i32 : i32
    %11 = tpu.iota {dimensions = array<i32: 0>} : vector<8x512xi32>
    %12 = vector.broadcast %10 : i32 to vector<8x512xi32>
    %13 = arith.addi %12, %11 : vector<8x512xi32>
    %c8_i32_8 = arith.constant 8 : i32
    %14 = vector.broadcast %c8_i32_8 : i32 to vector<8x512xi32>
    %15 = arith.cmpi slt, %13, %14 : vector<8x512xi32>
    %16 = arith.extui %15 : vector<8x512xi1> to vector<8x512xi32>
    %17 = arith.sitofp %16 : vector<8x512xi32> to vector<8x512xf32>
    %18 = arith.mulf %8, %17 : vector<8x512xf32>
    %c0_9 = arith.constant 0 : index
    %c0_10 = arith.constant 0 : index
    %19 = vector.load %arg6[%c0_9, %c0_10] : memref<2x512xf32, #tpu.memory_space<vmem>>, vector<1x512xf32>
    %cst_11 = arith.constant dense<0.000000e+00> : vector<512xf32>
    %20 = vector.multi_reduction <add>, %18, %cst_11 [0] : vector<8x512xf32> to vector<512xf32>
    %21 = vector.shape_cast %20 : vector<512xf32> to vector<1x512xf32>
    %22 = arith.addf %19, %21 : vector<1x512xf32>
    %c0_12 = arith.constant 0 : index
    %c0_13 = arith.constant 0 : index
    %23 = vector.load %arg6[%c0_12, %c0_13] : memref<2x512xf32, #tpu.memory_space<vmem>>, vector<1x512xf32>
    tpu.vector_store %arg6[%c0_12, %c0_13], %22 {strides = array<i32>} : memref<2x512xf32, #tpu.memory_space<vmem>>, vector<1x512xf32>,
    %c1 = arith.constant 1 : index
    %c0_14 = arith.constant 0 : index
    %24 = vector.load %arg6[%c1, %c0_14] : memref<2x512xf32, #tpu.memory_space<vmem>>, vector<1x512xf32>
    %25 = arith.mulf %18, %18 : vector<8x512xf32>
    %cst_15 = arith.constant dense<0.000000e+00> : vector<512xf32>
    %26 = vector.multi_reduction <add>, %25, %cst_15 [0] : vector<8x512xf32> to vector<512xf32>
    %27 = vector.shape_cast %26 : vector<512xf32> to vector<1x512xf32>
    %28 = arith.addf %24, %27 : vector<1x512xf32>
    %c1_16 = arith.constant 1 : index
    %c0_17 = arith.constant 0 : index
    %29 = vector.load %arg6[%c1_16, %c0_17] : memref<2x512xf32, #tpu.memory_space<vmem>>, vector<1x512xf32>
    tpu.vector_store %arg6[%c1_16, %c0_17], %28 {strides = array<i32>} : memref<2x512xf32, #tpu.memory_space<vmem>>, vector<1x512xf32>,
    return
  }
  func.func @transform_0(%arg0: i32, %arg1: i32) -> (i32, i32) {
    %c0_i32 = arith.constant 0 : i32
    %c0_i32_0 = arith.constant 0 : i32
    return %arg1, %c0_i32 : i32, i32
  }
  func.func @transform_1(%arg0: i32, %arg1: i32) -> (i32, i32) {
    %c0_i32 = arith.constant 0 : i32
    %c0_i32_0 = arith.constant 0 : i32
    return %c0_i32, %arg0 : i32, i32
  }
  func.func @transform_2(%arg0: i32, %arg1: i32) -> (i32, i32) {
    %c0_i32 = arith.constant 0 : i32
    %c0_i32_0 = arith.constant 0 : i32
    return %c0_i32, %arg0 : i32, i32
  }
  func.func @transform_3(%arg0: i32, %arg1: i32) -> (i32, i32) {
    %c0_i32 = arith.constant 0 : i32
    return %arg1, %arg0 : i32, i32
  }
  func.func @transform_4(%arg0: i32, %arg1: i32) -> (i32, i32) {
    %c0_i32 = arith.constant 0 : i32
    %c0_i32_0 = arith.constant 0 : i32
    return %c0_i32, %arg0 : i32, i32
  }
}

</mosaic_0001>

<bundles_post_ra>
// kernel: tpu_custom_call.1
= control target key start
LH: loop header
LB: loop body
LE: loop exit
PB: predicated region body
PF: predicated region fallthrough
CT: control target
= control target key end

     0   :  { %10 = vsyncpa [#allocation3], 0  ;;  %s509_s0 = inlined_call_operand.hbm [shape: f32[8,32], index: 0, kind: input, shape index: {}]   ;;  %s510_s1 = inlined_call_operand.hbm [shape: f32[32,512], index: 1, kind: input, shape index: {}]   ;;  %s511_s2 = inlined_call_operand.hbm [shape: f32[1,512], index: 2, kind: input, shape index: {}]   ;;  %s512_s3 = inlined_call_operand.hbm [shape: f32[8,512], index: 3, kind: output, shape index: {0}]   ;;  %s513_s4 = inlined_call_operand.hbm [shape: f32[2,512], index: 4, kind: output, shape index: {1}]  }
   0x1   :  { %11 = vsyncpa [#allocation6], 0 }
   0x2   :  { %12 = vsyncpa [#allocation4], 0  ;;  %s29_s17 = sshll.u32 %s510_s1, 4  ;;  %s30_s17 = int_to_ptr.hbm [resolvable:$true] %s29_s17 }
   0x3   :  { %13 = vsyncpa [#allocation10], 0  ;;  %s455_s18 = smov [#allocation5]   ;;  %s19_s22 = sshll.u32 %s509_s0, 4  ;;  %s20_s22 = int_to_ptr.hbm [resolvable:$true] %s19_s22 }
   0x4   :  { %s31_s19 = sshll.u32 %s455_s18, 4  ;;  %s456_s23 = smov 512   ;;  %s32_s19 = int_to_ptr.vmem [resolvable:$true] %s31_s19 }
   0x5   :  { %s457_s24 = smov 32   ;;  %s458_s25 = smov [#allocation2]  }
   0x6   :  { %37 = dma.hbm_to_vmem [thread:$0]  %s30_s17, 2048, %s32_s19, [#allocation6], %s456_s23, %s456_s23, %s457_s24  }
   0x7   :  { %s21_s26 = sshll.u32 %s458_s25, 4  ;;  %s43_s29 = sshll.u32 %s511_s2, 4  ;;  %s22_s26 = int_to_ptr.vmem [resolvable:$true] %s21_s26  ;;  %s44_s29 = int_to_ptr.hbm [resolvable:$true] %s43_s29 }
   0x8   :  { %24 = dma.hbm_to_vmem [thread:$0]  %s20_s22, 128, %s22_s26, [#allocation3]  }
   0x9   :  { %s459_s1 = smov [#allocation7]  }
   0xa   :  { %s45_s30 = sshll.u32 %s459_s1, 4  ;;  %s46_s30 = int_to_ptr.vmem [resolvable:$true] %s45_s30 }
   0xb   :  { %48 = dma.hbm_to_vmem [thread:$0]  %s44_s29, 64, %s46_s30, [#allocation6]  }
   0xc   :  { %447 = dma.done.wait [#allocation3], 128  }
   0xd   :  { %448 = vsyncadd [#allocation3], 4294967168 }
   0xe   :  { %449 = dma.done.wait [#allocation6], 2112  }
   0xf   :  { %450 = vsyncadd [#allocation6], 4294965184  ;;  %v80_v0 = vld [vmem:[#allocation5 + $0x68] sm:$0xff]  ;;  %v81_v1 = vld [vmem:[#allocation5 + $0x70] sm:$0xff]  ;;  %vm93_vm0 = vcmask 261120   ;;  %v460_v17 = vmov 0.0  }
  0x10   :  { %v82_v2 = vld [vmem:[#allocation5 + $0x78] sm:$0xff]  ;;  %129 = vmatpush.msra.mxu1 %v80_v0  ;;  %149 = vmatpush.msra.mxu2 %v81_v1  ;;  %v79_v3 = vld [vmem:[#allocation5 + $0x60] sm:$0xff]  ;;  %v76_v4 = vld [vmem:[#allocation5 + $0x48] sm:$0xff]  ;;  %65 = vst [vmem:[#allocation9] sm:$0xff] %v460_v17  ;;  %s461_s0 = smov [#allocation8]   ;;  %s288_s7 = sshll.u32 %s512_s3, 4  ;;  %s289_s7 = int_to_ptr.hbm [resolvable:$true] %s288_s7 }
  0x11   :  { %v77_v5 = vld [vmem:[#allocation5 + $0x50] sm:$0xff]  ;;  %169 = vmatpush.msra.mxu3 %v82_v2  ;;  %109 = vmatpush.msra.mxu0 %v79_v3  ;;  %v78_v6 = vld [vmem:[#allocation5 + $0x58] sm:$0xff]  ;;  %v75_v7 = vld [vmem:[#allocation5 + $0x40] sm:$0xff]  ;;  %s286_s2 = sshll.u32 %s461_s0, 4  ;;  %vm225_vm1 = vcmask 1040384   ;;  %vm227_vm2 = vcmask 1042434   ;;  %s287_s2 = int_to_ptr.vmem [resolvable:$true] %s286_s2 }
  0x12   :  { %v72_v8 = vld [vmem:[#allocation5 + $0x28] sm:$0xff]  ;;  %130 = vmatpush.msra.mxu1 %v76_v4  ;;  %150 = vmatpush.msra.mxu2 %v77_v5  ;;  %v73_v9 = vld [vmem:[#allocation5 + $0x30] sm:$0xff]  ;;  %v74_v10 = vld [vmem:[#allocation5 + $0x38] sm:$0xff]  ;;  %vm229_vm3 = vcmask 1041408   ;;  %s462_s3 = smov [#allocation9]   ;;  %s299_s11 = sshll.u32 %s513_s4, 4  ;;  %s300_s11 = int_to_ptr.hbm [resolvable:$true] %s299_s11 }
  0x13   :  { %v71_v11 = vld [vmem:[#allocation5 + $0x20] sm:$0xff]  ;;  %170 = vmatpush.msra.mxu3 %v78_v6  ;;  %110 = vmatpush.msra.mxu0 %v75_v7  ;;  %v68_v12 = vld [vmem:[#allocation5 + $0x8] sm:$0xff]  ;;  %v69_v13 = vld [vmem:[#allocation5 + $0x10] sm:$0xff]  ;;  %s297_s8 = sshll.u32 %s462_s3, 4  ;;  %s298_s8 = int_to_ptr.vmem [resolvable:$true] %s297_s8 }
  0x14   :  { %131 = vmatpush.msra.mxu1 %v72_v8  ;;  %151 = vmatpush.msra.mxu2 %v73_v9  ;;  %v70_v14 = vld [vmem:[#allocation5 + $0x18] sm:$0xff]  ;;  %v67_v16 = vld [vmem:[#allocation5] sm:$0xff] }
  0x15   :  { %v66_v15 = vld [vmem:[#allocation2] sm:$0xff]  ;;  %171 = vmatpush.msra.mxu3 %v74_v10  ;;  %111 = vmatpush.msra.mxu0 %v71_v11  ;;  %v83_v18 = vld [vmem:[#allocation7] sm:$0xf] }
  0x16   :  { %132 = vmatpush.msra.mxu1 %v68_v12  ;;  %152 = vmatpush.msra.mxu2 %v69_v13  ;;  %v86_v19 = vperm.slane %v83_v18, 1  ;;  %v85_v21 = vperm.slane %v83_v18, 0  ;;  %v87_v27 = vperm.slane %v83_v18, 2  ;;  %v88_v28 = vperm.slane %v83_v18, 3 }
  0x17   :  { %172 = vmatpush.msra.mxu3 %v70_v14  ;;  %316 = vmatmul.msk.f32.vlgmr.msra.gmra.mxu1 %vm93_vm0, %v66_v15 }
  0x18   :  { %317 = vmatmul.msk.f32.vlgmr.msra.gmra.mxu2 %vm93_vm0, %v66_v15  ;;  %318 = vmatmul.msk.f32.vlgmr.msra.gmra.mxu3 %vm93_vm0, %v66_v15 }
  0x19   :  { %112 = vmatpush.msra.mxu0 %v67_v16 }
  0x1a   :  { %315 = vmatmul.msk.f32.vlgmr.msra.gmra.mxu0 %vm93_vm0, %v66_v15 }
  0x94   :  { %v134_v20 = vpop.f32.mrf.mxu1 }
  0x95   :  { %v135_v22 = vadd.f32 %v134_v20, %v86_v19  ;;  %v233_v19 = vlaneseq }
  0x97   :  { %178 = vst [vmem:[#allocation8 + $0x8] sm:$0xff] %v135_v22  ;;  %v200_v23 = vrot.slane %v135_v22, 4  ;;  %v241_v24 = vmul.f32 %v135_v22, %v135_v22  ;;  %v114_v25 = vpop.f32.mrf.mxu0  ;;  %vm235_vm4 = vcmp.lt.s32.totalorder %v233_v19, 512 }
  0x98   :  { %v115_v26 = vadd.f32 %v114_v25, %v85_v21  ;;  %v193_v25 = vld [vmem:[#allocation9] ss:$2 sm:$0xf] }
  0x99   :  { %v201_v29 = vadd.f32 %v200_v23, %v135_v22  ;;  %v250_v30 = vrot.slane %v241_v24, 4 }
  0x9a   :  { %177 = vst [vmem:[#allocation8] sm:$0xff] %v115_v26  ;;  %v194_v31 = vrot.slane %v115_v26, 4  ;;  %v240_v32 = vmul.f32 %v115_v26, %v115_v26 }
  0x9b   :  { %v202_v33 = vrot.slane %v201_v29, 2  ;;  %v251_v34 = vadd.f32 %v250_v30, %v241_v24  ;;  %v154_v35 = vpop.f32.mrf.mxu2  ;;  %v174_v36 = vpop.f32.mrf.mxu3  ;;  %v239_v30 = vld [vmem:[#allocation9 + $0x1] ss:$2 sm:$0xf] }
  0x9c   :  { %v195_v37 = vadd.f32 %v194_v31, %v115_v26  ;;  %v244_v38 = vrot.slane %v240_v32, 4  ;;  %v155_v39 = vadd.f32 %v154_v35, %v87_v27  ;;  %v175_v40 = vadd.f32 %v174_v36, %v88_v28 }
  0x9d   :  { %v203_v41 = vadd.f32 %v202_v33, %v201_v29  ;;  %v252_v42 = vrot.slane %v251_v34, 2 }
  0x9e   :  { %v196_v43 = vrot.slane %v195_v37, 2  ;;  %v245_v44 = vadd.f32 %v244_v38, %v240_v32  ;;  %179 = vst [vmem:[#allocation8 + $0x10] sm:$0xff] %v155_v39  ;;  %v206_v45 = vrot.slane %v155_v39, 4  ;;  %v242_v46 = vmul.f32 %v155_v39, %v155_v39 }
  0x9f   :  { %v253_v47 = vadd.f32 %v252_v42, %v251_v34  ;;  %180 = vst [vmem:[#allocation8 + $0x18] sm:$0xff] %v175_v40  ;;  %v212_v48 = vrot.slane %v175_v40, 4  ;;  %v243_v49 = vmul.f32 %v175_v40, %v175_v40  ;;  %v204_v53 = vrot.slane %v203_v41, 1 }
  0xa0   :  { %v246_v50 = vrot.slane %v245_v44, 2  ;;  %v207_v51 = vadd.f32 %v206_v45, %v155_v39  ;;  %v256_v52 = vrot.slane %v242_v46, 4  ;;  %291 = dma.vmem_to_hbm [thread:$0]  %s287_s2, 512, %s289_s7, [#allocation4]   ;;  %v197_v54 = vadd.f32 %v196_v43, %v195_v37 }
  0xa1   :  { %v213_v55 = vadd.f32 %v212_v48, %v175_v40  ;;  %v262_v56 = vrot.slane %v243_v49, 4  ;;  %v254_v59 = vrot.slane %v253_v47, 1  ;;  %v205_v1 = vadd.f32 %v204_v53, %v203_v41 }
  0xa2   :  { %v208_v57 = vrot.slane %v207_v51, 2  ;;  %v257_v58 = vadd.f32 %v256_v52, %v242_v46  ;;  %v247_v60 = vadd.f32 %v246_v50, %v245_v44  ;;  %v198_v2 = vrot.slane %v197_v54, 1 }
  0xa3   :  { %v214_v61 = vrot.slane %v213_v55, 2  ;;  %v263_v62 = vadd.f32 %v262_v56, %v243_v49  ;;  %v255_v7 = vadd.f32 %v254_v59, %v253_v47  ;;  %v222_v13 = vrot.slane %v205_v1, 7 }
  0xa4   :  { %v209_v63 = vadd.f32 %v208_v57, %v207_v51  ;;  %v258_v0 = vrot.slane %v257_v58, 2  ;;  %v248_v8 = vrot.slane %v247_v60, 1  ;;  %v199_v14 = vadd.f32 %v198_v2, %v197_v54 }
  0xa5   :  { %v215_v3 = vadd.f32 %v214_v61, %v213_v55  ;;  %v264_v4 = vrot.slane %v263_v62, 2  ;;  %v272_v20 = vrot.slane %v255_v7, 7 }
  0xa6   :  { %v210_v5 = vrot.slane %v209_v63, 1  ;;  %v259_v6 = vadd.f32 %v258_v0, %v257_v58  ;;  %v249_v21 = vadd.f32 %v248_v8, %v247_v60  ;;  %v226_v27 = vsel %vm225_vm1, %v199_v14, %v222_v13 }
  0xa7   :  { %v216_v9 = vrot.slane %v215_v3, 1  ;;  %v265_v10 = vadd.f32 %v264_v4, %v263_v62 }
  0xa8   :  { %v211_v11 = vadd.f32 %v210_v5, %v209_v63  ;;  %v260_v12 = vrot.slane %v259_v6, 1  ;;  %v275_v32 = vsel %vm225_vm1, %v249_v21, %v272_v20 }
  0xa9   :  { %v217_v15 = vadd.f32 %v216_v9, %v215_v3  ;;  %v266_v16 = vrot.slane %v265_v10, 1 }
  0xaa   :  { %v223_v17 = vrot.slane %v211_v11, 6  ;;  %v261_v18 = vadd.f32 %v260_v12, %v259_v6 }
  0xab   :  { %v224_v22 = vrot.slane %v217_v15, 5  ;;  %v267_v23 = vadd.f32 %v266_v16, %v265_v10 }
  0xac   :  { %v273_v24 = vrot.slane %v261_v18, 6 }
  0xad   :  { %v274_v26 = vrot.slane %v267_v23, 5  ;;  %v228_v28 = vsel %vm227_vm2, %v223_v17, %v224_v22 }
  0xae   :  { %v230_v29 = vsel %vm229_vm3, %v226_v27, %v228_v28 }
  0xaf   :  { %v232_v31 = vadd.f32 %v230_v29, %v193_v25  ;;  %v276_v33 = vsel %vm227_vm2, %v273_v24, %v274_v26 }
  0xb0   :  { %v277_v34 = vsel %vm229_vm3, %v275_v32, %v276_v33 }
  0xb1   :  { %237 = vst.msk [vmem:[#allocation9] ss:$2 sm:$0xf] %vm235_vm4, %v232_v31  ;;  %v279_v35 = vadd.f32 %v277_v34, %v239_v30 }
  0xb3   :  { %280 = vst.msk [vmem:[#allocation9 + $0x1] ss:$2 sm:$0xf] %vm235_vm4, %v279_v35 }
  0xb4   :  { %302 = dma.vmem_to_hbm [thread:$0]  %s298_s8, 128, %s300_s11, [#allocation10]  }
  0xb5   :  { %451 = dma.done.wait [#allocation4], 512  }
  0xb6   :  { %452 = vsyncadd [#allocation4], 4294966784 }
  0xb7   :  { %453 = dma.done.wait [#allocation10], 128  }
  0xb8   :  { %454 = vsyncadd [#allocation10], 4294967168 }
  0xb9   :  { %311 = vsyncpa [#allocation3], 1 }
  0xba   :  { %312 = vsyncpa [#allocation6], 1 }
  0xbb   :  { %313 = vsyncpa [#allocation4], 1 }
  0xbc   :  { %314 = vsyncpa [#allocation10], 1 }

</bundles_post_ra>
